<compile_context>
chip_gen: v7x
topology: tpu7x:2x2x1
jax: 0.10.0
libtpu: 0.0.40
codegen_flags: <defaults>
</compile_context>

<pallas_src>
import jax
import jax.numpy as jnp
from jax.experimental import pallas as pl
from jax.experimental.pallas import tpu as pltpu


def _round_up(x, m):
    return (x + m - 1) // m * m


def _random_predictor_kernel(idx_ref, probs_ref, acc_ref):
    # idx_ref:   (tile_b, tile_d) int32  — batch on sublanes, draws on lanes
    # probs_ref: (tile_b, tile_c) f32    — batch on sublanes, classes on lanes
    # acc_ref:   (tile_b, tile_c) int32 scratch, resident across the draw axis
    j = pl.program_id(1)          # class-tile index
    k = pl.program_id(2)          # draw-tile index (reduction axis, last)
    tile_d = idx_ref.shape[1]
    tile_c = probs_ref.shape[1]

    # Global class ids for this class tile: one (1, tile_c) lane iota
    # (a single vreg row); sublane broadcast happens for free in the compare.
    cols = jax.lax.broadcasted_iota(jnp.int32, (1, tile_c), 1) + j * tile_c

    idx_tile = idx_ref[...]                       # (tile_b, tile_d) int32

    # Per-draw OR-accumulate.  Each draw is a (tile_b, 1) column — batch is
    # already on sublanes, so the lane broadcast against `cols` needs no
    # relayout.  Padded draws carry -1 and never match any class id.
    hit = idx_tile[:, 0:1] == cols                # (tile_b, tile_c) bool
    for d in range(1, tile_d):                    # static, fully unrolled
        hit = hit | (idx_tile[:, d:d + 1] == cols)

    @pl.when(k == 0)
    def _init():
        acc_ref[...] = jnp.zeros_like(acc_ref)

    acc_ref[...] = acc_ref[...] | hit.astype(jnp.int32)

    @pl.when(k == pl.num_programs(2) - 1)
    def _finalize():
        # Single cast to float32 at the final store (lane-dense output tile).
        probs_ref[...] = acc_ref[...].astype(jnp.float32)


def random_predictor(inputs, num_classes, seed=0, *, tile_b_max=256):
    """Pallas equivalent of RandomPredictor.forward.

    inputs: int batch_size, or dict containing 'curr_node_id' (array whose
            leading dim is the batch size), matching the PyTorch module.
    Returns float32 array of shape [batch_size, num_classes].
    """
    batch_size = (
        inputs if isinstance(inputs, int) else int(inputs["curr_node_id"].shape[0])
    )

    # --- draw (reduction) axis tiling: static unroll inside one grid step ---
    DRAW_TILE_MAX = 256
    if num_classes <= DRAW_TILE_MAX:
        tile_d = num_classes               # equals full array dim -> no 128 rule
        n_draws_pad = num_classes
    else:
        tile_d = DRAW_TILE_MAX             # multiple of 128 (lane axis)
        n_draws_pad = _round_up(num_classes, tile_d)

    # --- class (lane) axis tiling: lane-dense output, bounded VMEM on v7x ---
    c_pad = _round_up(max(num_classes, 128), 128)
    if c_pad > 2048:
        tile_c = 1024
        c_pad = _round_up(c_pad, tile_c)
    else:
        tile_c = c_pad

    # --- batch (sublane) axis tiling: >=2 programs when possible (v7x 2 TCs) ---
    b_pad = _round_up(batch_size, 8)
    tile_b = min(tile_b_max, b_pad)
    if b_pad // tile_b < 2 and b_pad >= 16:
        tile_b = _round_up(b_pad // 2, 8)
    b_pad = _round_up(b_pad, tile_b)

    # Precompute exact int32 draws (torch.randint equivalent) in the wrapper —
    # batch on rows/sublanes, draws on columns/lanes — so the kernel's inner
    # loop is pure compare+or with no index math and no relayout.
    key = jax.random.PRNGKey(seed)
    idx = jax.random.randint(
        key, (b_pad, n_draws_pad), 0, num_classes, dtype=jnp.int32
    )
    if n_draws_pad != num_classes:
        valid = jnp.arange(n_draws_pad, dtype=jnp.int32) < num_classes
        idx = jnp.where(valid[None, :], idx, jnp.int32(-1))  # padded draws: no hit

    grid = (b_pad // tile_b, c_pad // tile_c, n_draws_pad // tile_d)

    probs_pad = pl.pallas_call(
        _random_predictor_kernel,
        out_shape=jax.ShapeDtypeStruct((b_pad, c_pad), jnp.float32),
        grid_spec=pltpu.PrefetchScalarGridSpec(
            num_scalar_prefetch=0,
            grid=grid,
            in_specs=[pl.BlockSpec((tile_b, tile_d), lambda i, j, k: (i, k))],
            out_specs=pl.BlockSpec((tile_b, tile_c), lambda i, j, k: (i, j)),
            scratch_shapes=[pltpu.VMEM((tile_b, tile_c), jnp.int32)],
        ),
        compiler_params=pltpu.CompilerParams(
            dimension_semantics=("parallel", "parallel", "arbitrary"),
        ),
    )(idx)

    return probs_pad[:batch_size, :num_classes]


if __name__ == "__main__":
    # Small shapes consistent with the module: batch=4, num_classes=8.
    num_classes = 8
    batch = 4

    key = jax.random.PRNGKey(0)
    # dict-style input mirroring inputs['curr_node_id'].size(0)
    curr_node_id = jax.random.randint(key, (batch,), 0, 100, dtype=jnp.int32)

    probs = random_predictor({"curr_node_id": curr_node_id}, num_classes, seed=0)
    probs = jax.block_until_ready(probs)

    # Sanity checks on the scatter_ semantics.
    assert probs.shape == (batch, num_classes)
    assert probs.dtype == jnp.float32
    assert bool(jnp.all((probs == 0.0) | (probs == 1.0)))       # only 0s and 1s
    assert bool(jnp.all(probs.sum(axis=-1) >= 1.0))             # each row got >= 1 hit
    assert bool(jnp.all(probs.sum(axis=-1) <= num_classes))     # at most num_classes hits

    # int-style input path
    probs2 = jax.block_until_ready(random_predictor(batch, num_classes, seed=1))
    assert probs2.shape == (batch, num_classes)
    assert bool(jnp.all((probs2 == 0.0) | (probs2 == 1.0)))

    # Exercise the multi-tile paths (draw-axis grid accumulation, batch split,
    # sentinel-padded draws) at still-small shapes.
    probs3 = jax.block_until_ready(random_predictor(20, 300, seed=2))
    assert probs3.shape == (20, 300)
    assert bool(jnp.all((probs3 == 0.0) | (probs3 == 1.0)))
    assert bool(jnp.all(probs3.sum(axis=-1) >= 1.0))
    assert bool(jnp.all(probs3.sum(axis=-1) <= 300))

    print("KERNEL_OK")
</pallas_src>

<mosaic_0001>
module attributes {stable_mosaic.version = 11 : i64} {
  func.func @_random_predictor_kernel(%arg0: i32, %arg1: i32, %arg2: i32, %arg3: memref<8x8xi32, #tpu.memory_space<vmem>>, %arg4: memref<8x128xf32, #tpu.memory_space<vmem>>, %arg5: memref<8x128xi32, #tpu.memory_space<vmem>>) attributes {dimension_semantics = [#tpu.dimension_semantics<parallel>, #tpu.dimension_semantics<parallel>, #tpu.dimension_semantics<arbitrary>], iteration_bounds = array<i64: 1, 1, 1>, scalar_prefetch = 0 : i64, scratch_operands = 1 : i64, tpu.core_type = #tpu.core_type<tc>, window_params = [{transform_indices = @transform_0, window_bounds = array<i64: 8, 8>}, {transform_indices = @transform_1, window_bounds = array<i64: 8, 128>}]} {
    %0 = tpu.iota {dimensions = array<i32: 1>} : vector<1x128xi32>
    %c128_i32 = arith.constant 128 : i32
    %1 = arith.muli %arg1, %c128_i32 : i32
    %2 = vector.broadcast %1 : i32 to vector<1x128xi32>
    %3 = arith.addi %0, %2 : vector<1x128xi32>
    %c0 = arith.constant 0 : index
    %c0_0 = arith.constant 0 : index
    %4 = vector.load %arg3[%c0, %c0_0] : memref<8x8xi32, #tpu.memory_space<vmem>>, vector<8x8xi32>
    %5 = vector.extract_strided_slice %4 {offsets = [0, 0], sizes = [8, 1], strides = [1, 1]} : vector<8x8xi32> to vector<8x1xi32>
    %6 = vector.broadcast %5 : vector<8x1xi32> to vector<8x128xi32>
    %7 = vector.broadcast %3 : vector<1x128xi32> to vector<8x128xi32>
    %8 = arith.cmpi eq, %6, %7 : vector<8x128xi32>
    %9 = vector.extract_strided_slice %4 {offsets = [0, 1], sizes = [8, 1], strides = [1, 1]} : vector<8x8xi32> to vector<8x1xi32>
    %10 = vector.broadcast %9 : vector<8x1xi32> to vector<8x128xi32>
    %11 = vector.broadcast %3 : vector<1x128xi32> to vector<8x128xi32>
    %12 = arith.cmpi eq, %10, %11 : vector<8x128xi32>
    %13 = arith.ori %8, %12 : vector<8x128xi1>
    %14 = vector.extract_strided_slice %4 {offsets = [0, 2], sizes = [8, 1], strides = [1, 1]} : vector<8x8xi32> to vector<8x1xi32>
    %15 = vector.broadcast %14 : vector<8x1xi32> to vector<8x128xi32>
    %16 = vector.broadcast %3 : vector<1x128xi32> to vector<8x128xi32>
    %17 = arith.cmpi eq, %15, %16 : vector<8x128xi32>
    %18 = arith.ori %13, %17 : vector<8x128xi1>
    %19 = vector.extract_strided_slice %4 {offsets = [0, 3], sizes = [8, 1], strides = [1, 1]} : vector<8x8xi32> to vector<8x1xi32>
    %20 = vector.broadcast %19 : vector<8x1xi32> to vector<8x128xi32>
    %21 = vector.broadcast %3 : vector<1x128xi32> to vector<8x128xi32>
    %22 = arith.cmpi eq, %20, %21 : vector<8x128xi32>
    %23 = arith.ori %18, %22 : vector<8x128xi1>
    %24 = vector.extract_strided_slice %4 {offsets = [0, 4], sizes = [8, 1], strides = [1, 1]} : vector<8x8xi32> to vector<8x1xi32>
    %25 = vector.broadcast %24 : vector<8x1xi32> to vector<8x128xi32>
    %26 = vector.broadcast %3 : vector<1x128xi32> to vector<8x128xi32>
    %27 = arith.cmpi eq, %25, %26 : vector<8x128xi32>
    %28 = arith.ori %23, %27 : vector<8x128xi1>
    %29 = vector.extract_strided_slice %4 {offsets = [0, 5], sizes = [8, 1], strides = [1, 1]} : vector<8x8xi32> to vector<8x1xi32>
    %30 = vector.broadcast %29 : vector<8x1xi32> to vector<8x128xi32>
    %31 = vector.broadcast %3 : vector<1x128xi32> to vector<8x128xi32>
    %32 = arith.cmpi eq, %30, %31 : vector<8x128xi32>
    %33 = arith.ori %28, %32 : vector<8x128xi1>
    %34 = vector.extract_strided_slice %4 {offsets = [0, 6], sizes = [8, 1], strides = [1, 1]} : vector<8x8xi32> to vector<8x1xi32>
    %35 = vector.broadcast %34 : vector<8x1xi32> to vector<8x128xi32>
    %36 = vector.broadcast %3 : vector<1x128xi32> to vector<8x128xi32>
    %37 = arith.cmpi eq, %35, %36 : vector<8x128xi32>
    %38 = arith.ori %33, %37 : vector<8x128xi1>
    %39 = vector.extract_strided_slice %4 {offsets = [0, 7], sizes = [8, 1], strides = [1, 1]} : vector<8x8xi32> to vector<8x1xi32>
    %40 = vector.broadcast %39 : vector<8x1xi32> to vector<8x128xi32>
    %41 = vector.broadcast %3 : vector<1x128xi32> to vector<8x128xi32>
    %42 = arith.cmpi eq, %40, %41 : vector<8x128xi32>
    %43 = arith.ori %38, %42 : vector<8x128xi1>
    %c0_i32 = arith.constant 0 : i32
    %44 = arith.cmpi eq, %arg2, %c0_i32 : i32
    %45 = arith.extui %44 : i1 to i32
    %c0_i32_1 = arith.constant 0 : i32
    %46 = arith.cmpi ne, %45, %c0_i32_1 : i32
    scf.if %46 {
      %c0_i32_8 = arith.constant 0 : i32
      %54 = vector.broadcast %c0_i32_8 : i32 to vector<8x128xi32>
      %c0_9 = arith.constant 0 : index
      %c0_10 = arith.constant 0 : index
      %55 = vector.load %arg5[%c0_9, %c0_10] : memref<8x128xi32, #tpu.memory_space<vmem>>, vector<8x128xi32>
      tpu.vector_store %arg5[%c0_9, %c0_10], %54 {strides = array<i32>} : memref<8x128xi32, #tpu.memory_space<vmem>>, vector<8x128xi32>,
    } else {
    }
    %c0_2 = arith.constant 0 : index
    %c0_3 = arith.constant 0 : index
    %47 = vector.load %arg5[%c0_2, %c0_3] : memref<8x128xi32, #tpu.memory_space<vmem>>, vector<8x128xi32>
    %48 = arith.extui %43 : vector<8x128xi1> to vector<8x128xi32>
    %49 = arith.ori %47, %48 : vector<8x128xi32>
    %c0_4 = arith.constant 0 : index
    %c0_5 = arith.constant 0 : index
    %50 = vector.load %arg5[%c0_4, %c0_5] : memref<8x128xi32, #tpu.memory_space<vmem>>, vector<8x128xi32>
    tpu.vector_store %arg5[%c0_4, %c0_5], %49 {strides = array<i32>} : memref<8x128xi32, #tpu.memory_space<vmem>>, vector<8x128xi32>,
    %c0_i32_6 = arith.constant 0 : i32
    %51 = arith.cmpi eq, %arg2, %c0_i32_6 : i32
    %52 = arith.extui %51 : i1 to i32
    %c0_i32_7 = arith.constant 0 : i32
    %53 = arith.cmpi ne, %52, %c0_i32_7 : i32
    scf.if %53 {
      %c0_8 = arith.constant 0 : index
      %c0_9 = arith.constant 0 : index
      %54 = vector.load %arg5[%c0_8, %c0_9] : memref<8x128xi32, #tpu.memory_space<vmem>>, vector<8x128xi32>
      %55 = arith.sitofp %54 : vector<8x128xi32> to vector<8x128xf32>
      %c0_10 = arith.constant 0 : index
      %c0_11 = arith.constant 0 : index
      %56 = vector.load %arg4[%c0_10, %c0_11] : memref<8x128xf32, #tpu.memory_space<vmem>>, vector<8x128xf32>
      tpu.vector_store %arg4[%c0_10, %c0_11], %55 {strides = array<i32>} : memref<8x128xf32, #tpu.memory_space<vmem>>, vector<8x128xf32>,
    } else {
    }
    return
  }
  func.func @transform_0(%arg0: i32, %arg1: i32, %arg2: i32) -> (i32, i32) {
    %c0_i32 = arith.constant 0 : i32
    return %arg0, %arg2 : i32, i32
  }
  func.func @transform_1(%arg0: i32, %arg1: i32, %arg2: i32) -> (i32, i32) {
    %c0_i32 = arith.constant 0 : i32
    return %arg0, %arg1 : i32, i32
  }
}

</mosaic_0001>

<bundles_post_ra>
// kernel: tpu_custom_call.1
= control target key start
LH: loop header
LB: loop body
LE: loop exit
PB: predicated region body
PF: predicated region fallthrough
CT: control target
= control target key end

     0   :  { %6 = vsyncpa [#allocation4], 0  ;;  %s210_s0 = inlined_call_operand.hbm [shape: s32[8,8], index: 0, kind: input, shape index: {}]   ;;  %s211_s1 = inlined_call_operand.hbm [shape: f32[8,128], index: 1, kind: output, shape index: {}]  }
   0x1   :  { %7 = vsyncpa [#allocation5], 0  ;;  %s165_s6 = smov [#allocation3]   ;;  %s117_s10 = scalar_lea.hbm %s210_s0, 128 }
   0x2   :  { %s14_s7 = sshll.u32 %s165_s6, 4  ;;  %p118_p0 = scmp.ne.s32.totalorder %s210_s0, %s117_s10  ;;  %s15_s7 = int_to_ptr.vmem [resolvable:$true] %s14_s7 }
   0x3   :  { %p121_p1 = scmp.lt.u32.totalorder %s117_s10, %s210_s0 }
   0x5   :  { %p123_p2 = pnand %p121_p1, %p118_p0 }
   0x7   :  { %126 = shalt.err (!%p123_p2)
}
   0x8   :  { %s127_s15 = scalar_lea.vmem %s15_s7, 128  ;;  %p132_p4 = scmp.lt.s32.totalorder %s15_s7, %s15_s7 }
   0x9   :  { %p128_p3 = scmp.ne.s32.totalorder %s15_s7, %s127_s15  ;;  %p133_p5 = scmp.lt.s32.totalorder %s127_s15, %s127_s15 }
   0xb   :  { %p134_p6 = por %p133_p5, %p132_p4 }
   0xd   :  { %p135_p7 = pnand %p134_p6, %p128_p3 }
   0xf   :  { %138 = shalt.err (!%p135_p7)
}
  0x10   :  { %17 = dma.hbm_to_vmem [thread:$0]  %s210_s0, 128, %s15_s7, [#allocation4]  }
  0x11   :  { %161 = dma.done.wait [#allocation4], 128  }
  0x12   :  { %162 = vsyncadd [#allocation4], 4294967168  ;;  %v166_v0 = vmov 2   ;;  %v167_v1 = vmov 0   ;;  %v26_v2 = vld [vmem:[#allocation3] sm:$0xff]  ;;  %v168_v3 = vmov 3   ;;  %v21_v11 = vlaneseq }
  0x13   :  { %110 = vset.pattern.permute.xlu1 %v166_v0  ;;  %108 = vset.pattern.permute.xlu0 %v167_v1  ;;  %v169_v4 = vmov 1   ;;  %v170_v5 = vmov 4   ;;  %v171_v6 = vmov 5   ;;  %v172_v7 = vmov 6   ;;  %s174_s0 = smov [#allocation6]  }
  0x14   :  { %37 = vperm.xlu1 %110, %v26_v2   ;;  %28 = vperm.xlu0 %108, %v26_v2   ;;  %v173_v8 = vmov 7   ;;  %v22_v12 = vand.u32 127, %v21_v11  ;;  %s87_s18 = sshll.u32 %s174_s0, 4  ;;  %v175_v19 = vmov 0.0   ;;  %s88_s18 = int_to_ptr.vmem [resolvable:$true] %s87_s18 }
  0x15   :  { %s139_s19 = scalar_lea.vmem %s88_s18, 128  ;;  %p144_p9 = scmp.lt.s32.totalorder %s88_s18, %s88_s18 }
  0x16   :  { %p140_p8 = scmp.ne.s32.totalorder %s88_s18, %s139_s19  ;;  %p145_p10 = scmp.lt.s32.totalorder %s139_s19, %s139_s19 }
  0x18   :  { %111 = vset.pattern.permute.xlu1 %v168_v3  ;;  %109 = vset.pattern.permute.xlu0 %v169_v4  ;;  %p146_p11 = por %p145_p10, %p144_p9 }
  0x19   :  { %42 = vperm.xlu1 %111, %v26_v2   ;;  %32 = vperm.xlu0 %109, %v26_v2  }
  0x1a   :  { %p147_p12 = pnand %p146_p11, %p140_p8 }
  0x1d   :  { %112 = vset.pattern.permute.xlu1 %v170_v5  ;;  %113 = vset.pattern.permute.xlu0 %v171_v6 }
  0x1e   :  { %47 = vperm.xlu1 %112, %v26_v2   ;;  %52 = vperm.xlu0 %113, %v26_v2  }
  0x22   :  { %114 = vset.pattern.permute.xlu1 %v172_v7  ;;  %116 = vset.pattern.permute.xlu0 %v173_v8 }
  0x23   :  { %57 = vperm.xlu1 %114, %v26_v2  }
  0x27   :  { %115 = vset.pattern.permute.xlu1 %v173_v8 }
  0x28   :  { %62 = vperm.xlu1 %115, %v26_v2  }
  0x93   :  { %v38_v9 = vpop.permute.xlu1 %37  ;;  %v29_v10 = vpop.permute.xlu0 %28 }
  0x94   :  { %vm30_vm0 = vcmp.eq.s32.totalorder %v29_v10, %v22_v12  ;;  %vm39_vm3 = vcmp.eq.s32.totalorder %v38_v9, %v22_v12 }
  0x98   :  { %v43_v13 = vpop.permute.xlu1 %42  ;;  %v33_v14 = vpop.permute.xlu0 %32 }
  0x99   :  { %vm34_vm1 = vcmp.eq.s32.totalorder %v33_v14, %v22_v12  ;;  %vm44_vm6 = vcmp.eq.s32.totalorder %v43_v13, %v22_v12 }
  0x9a   :  { %vm35_vm2 = vmor %vm30_vm0, %vm34_vm1 }
  0x9b   :  { %vm40_vm4 = vmor %vm35_vm2, %vm39_vm3 }
  0x9c   :  { %vm45_vm7 = vmor %vm40_vm4, %vm44_vm6 }
  0x9d   :  { %v48_v15 = vpop.permute.xlu1 %47  ;;  %v53_v16 = vpop.permute.xlu0 %52 }
  0x9e   :  { %vm49_vm5 = vcmp.eq.s32.totalorder %v48_v15, %v22_v12  ;;  %vm54_vm9 = vcmp.eq.s32.totalorder %v53_v16, %v22_v12 }
  0x9f   :  { %vm50_vm8 = vmor %vm45_vm7, %vm49_vm5 }
  0xa0   :  { %vm55_vm11 = vmor %vm50_vm8, %vm54_vm9 }
  0xa2   :  { %v58_v17 = vpop.permute.xlu1 %57 }
  0xa3   :  { %vm59_vm10 = vcmp.eq.s32.totalorder %v58_v17, %v22_v12 }
  0xa4   :  { %vm60_vm12 = vmor %vm55_vm11, %vm59_vm10 }
  0xa7   :  { %v63_v18 = vpop.permute.xlu1 %62 }
  0xa8   :  { %vm64_vm13 = vcmp.eq.s32.totalorder %v63_v18, %v22_v12 }
  0xa9   :  { %vm65_vm14 = vmor %vm60_vm12, %vm64_vm13 }
  0xaa   :  { %v96_v20 = vsel %vm65_vm14, 1.0, %v175_v19 }
  0xab   :  { %80 = vst [vmem:[#allocation6] sm:$0xff] %v96_v20 }
  0xac   :  { %150 = shalt.err (!%p147_p12)
}
  0xad   :  { %s151_s22 = scalar_lea.hbm %s211_s1, 128 }
  0xae   :  { %p152_p13 = scmp.ne.s32.totalorder %s211_s1, %s151_s22  ;;  %p155_p0 = scmp.lt.u32.totalorder %s151_s22, %s211_s1 }
  0xb0   :  { %p157_p1 = pnand %p155_p0, %p152_p13 }
  0xb2   :  { %160 = shalt.err (!%p157_p1)
}
  0xb3   :  { %90 = dma.vmem_to_hbm [thread:$0]  %s88_s18, 128, %s211_s1, [#allocation5]  }
  0xb4   :  { %163 = dma.done.wait [#allocation5], 128  }
  0xb5   :  { %164 = vsyncadd [#allocation5], 4294967168 }
  0xb6   :  { %94 = vsyncpa [#allocation4], 1 }
  0xb7   :  { %95 = vsyncpa [#allocation5], 1 }

</bundles_post_ra>
